<compile_context>
chip_gen: v5e
topology: v5e:2x2
jax: 0.10.0
libtpu: 0.0.40
codegen_flags: <defaults>
</compile_context>

<pallas_src>
import functools

import jax
import jax.numpy as jnp
from jax.experimental import pallas as pl
from jax.experimental.pallas import tpu as pltpu


def _round_up(x: int, m: int) -> int:
    return ((x + m - 1) // m) * m


def _choose_tile_rows(batch: int, dim: int, itemsize: int) -> int:
    """Largest batch tile (multiple of 8, <=1024) whose double-buffered inputs
    fit a conservative VMEM budget shared across TPU generations."""
    budget = 24 * 1024 * 1024                    # headroom under 32 MiB scoped VMEM
    per_row = 3 * 2 * dim * itemsize             # 3 inputs, double-buffered
    tb = min(1024, max(1, budget // max(per_row, 1)))
    tb = max(8, (tb // 8) * 8)                   # sublane-aligned
    tb = min(tb, _round_up(batch, 8))            # don't exceed (padded) batch
    return int(tb)


def _triplet_kernel(q_ref, p_ref, n_ref, m_ref, out_ref, *, distance, batch):
    q = q_ref[...].astype(jnp.float32)
    p = p_ref[...].astype(jnp.float32)
    n = n_ref[...].astype(jnp.float32)
    margin = m_ref[0]

    if distance == "cosine":
        eps = jnp.float32(1e-8)  # F.cosine_similarity default eps
        qp = jnp.sum(q * p, axis=-1, keepdims=True)   # (TB, 1)
        qn = jnp.sum(q * n, axis=-1, keepdims=True)
        qq = jnp.sum(q * q, axis=-1, keepdims=True)
        pp = jnp.sum(p * p, axis=-1, keepdims=True)
        nn = jnp.sum(n * n, axis=-1, keepdims=True)
        # 1 / max(||x||, eps) == rsqrt(max(||x||^2, eps^2)) -> EUP, frees VALU.
        inv_q = jax.lax.rsqrt(jnp.maximum(qq, eps * eps))
        inv_p = jax.lax.rsqrt(jnp.maximum(pp, eps * eps))
        inv_n = jax.lax.rsqrt(jnp.maximum(nn, eps * eps))
        # d_pos - d_neg = (-cos_p) - (-cos_n) = inv_q * (qn*inv_n - qp*inv_p)
        diff = inv_q * (qn * inv_n - qp * inv_p)
    else:  # "l2_norm"
        eps = jnp.float32(1e-6)  # F.pairwise_distance adds eps to the difference
        dqp = q - p + eps
        dqn = q - n + eps
        dist_pos = jnp.sqrt(jnp.sum(dqp * dqp, axis=-1, keepdims=True))
        dist_neg = jnp.sqrt(jnp.sum(dqn * dqn, axis=-1, keepdims=True))
        diff = dist_pos - dist_neg

    loss = jnp.maximum(diff + margin, 0.0)            # (TB, 1) relu

    # Mask tail-padding rows of the last tile so garbage rows contribute 0
    # (padded rows would otherwise add relu(garbage + margin) to the mean).
    tb = loss.shape[0]
    row = jax.lax.broadcasted_iota(jnp.int32, loss.shape, 0)
    valid = (pl.program_id(0) * tb + row) < batch
    out_ref[...] = jnp.where(valid, loss, jnp.float32(0.0))


def triplet_loss(query, positive, negative, margin, *, distance="cosine",
                 tile_rows=None):
    if distance not in ("cosine", "l2_norm"):
        raise NotImplementedError(f"Distance function [{distance}] is not recognize")
    B, D = query.shape
    itemsize = jnp.dtype(query.dtype).itemsize
    if tile_rows is None:
        tile_rows = _choose_tile_rows(B, D, itemsize)
    tb = max(8, _round_up(int(tile_rows), 8))
    num_tiles = -(-B // tb)

    margin = jnp.asarray(margin, jnp.float32).reshape((1,))
    kernel = functools.partial(_triplet_kernel, distance=distance, batch=B)

    # Advisory cost hint for the XLA scheduler (kernel is HBM-read bound).
    if distance == "cosine":
        flops = 10 * B * D + 12 * B
        transcendentals = 3 * B
    else:
        flops = 6 * B * D + 8 * B
        transcendentals = 2 * B
    cost = pl.CostEstimate(
        flops=int(flops),
        transcendentals=int(transcendentals),
        bytes_accessed=int(3 * B * D * itemsize + num_tiles * tb * 4),
    )

    per_row = pl.pallas_call(
        kernel,
        out_shape=jax.ShapeDtypeStruct((num_tiles * tb, 1), jnp.float32),
        grid=(num_tiles,),
        in_specs=[
            pl.BlockSpec((tb, D), lambda i: (i, 0)),
            pl.BlockSpec((tb, D), lambda i: (i, 0)),
            pl.BlockSpec((tb, D), lambda i: (i, 0)),
            pl.BlockSpec(memory_space=pltpu.SMEM),   # margin scalar
        ],
        out_specs=pl.BlockSpec((tb, 1), lambda i: (i, 0)),
        compiler_params=pltpu.CompilerParams(
            dimension_semantics=("parallel",),        # tiles independent -> v7x 2-TC
            vmem_limit_bytes=32 * 1024 * 1024,
        ),
        cost_estimate=cost,
    )(query, positive, negative, margin)

    # Tiny final reduction (masked rows are exactly 0).
    return jnp.sum(per_row) / jnp.float32(B)


def _reference(query, positive, negative, margin, *, distance="cosine"):
    """Plain-JAX reference matching the PyTorch semantics."""
    query = query.astype(jnp.float32)
    positive = positive.astype(jnp.float32)
    negative = negative.astype(jnp.float32)
    if distance == "cosine":
        eps = 1e-8
        def cos(a, b):
            num = jnp.sum(a * b, axis=-1)
            den = jnp.maximum(jnp.linalg.norm(a, axis=-1), eps) * \
                  jnp.maximum(jnp.linalg.norm(b, axis=-1), eps)
            return num / den
        d_pos = -cos(query, positive)
        d_neg = -cos(query, negative)
    else:
        eps = 1e-6
        d_pos = jnp.linalg.norm(query - positive + eps, axis=-1)
        d_neg = jnp.linalg.norm(query - negative + eps, axis=-1)
    return jnp.mean(jnp.maximum(d_pos - d_neg + margin, 0.0))


if __name__ == "__main__":
    key = jax.random.PRNGKey(0)
    kq, kp, kn = jax.random.split(key, 3)
    B, D = 20, 32                      # B not a multiple of the tile -> exercises masking
    query = jax.random.normal(kq, (B, D), jnp.float32)
    positive = jax.random.normal(kp, (B, D), jnp.float32)
    negative = jax.random.normal(kn, (B, D), jnp.float32)
    margin = jnp.float32(1.0)

    for dist in ("cosine", "l2_norm"):
        ref = _reference(query, positive, negative, margin, distance=dist)
        # Forced small tile: multi-tile grid + masked tail tile.
        out_tiled = jax.block_until_ready(
            triplet_loss(query, positive, negative, margin, distance=dist,
                         tile_rows=8))
        assert jnp.allclose(out_tiled, ref, atol=1e-4, rtol=1e-4), (dist, out_tiled, ref)
        # Auto tile selection path.
        out_auto = jax.block_until_ready(
            triplet_loss(query, positive, negative, margin, distance=dist))
        assert jnp.allclose(out_auto, ref, atol=1e-4, rtol=1e-4), (dist, out_auto, ref)

    # bf16 embedding path: kernel upcasts to f32 internally; reference uses the
    # same bf16-rounded inputs upcast to f32, so the match is tight.
    q16 = query.astype(jnp.bfloat16)
    p16 = positive.astype(jnp.bfloat16)
    n16 = negative.astype(jnp.bfloat16)
    ref16 = _reference(q16, p16, n16, margin, distance="cosine")
    out16 = jax.block_until_ready(
        triplet_loss(q16, p16, n16, margin, distance="cosine"))
    assert jnp.allclose(out16, ref16, atol=1e-3, rtol=1e-3), (out16, ref16)

    print("KERNEL_OK")
</pallas_src>

<mosaic_0001>
module attributes {stable_mosaic.version = 11 : i64} {
  func.func @_triplet_kernel(%arg0: i32, %arg1: memref<8x32xf32, #tpu.memory_space<vmem>>, %arg2: memref<8x32xf32, #tpu.memory_space<vmem>>, %arg3: memref<8x32xf32, #tpu.memory_space<vmem>>, %arg4: memref<1xf32, #tpu.memory_space<smem>>, %arg5: memref<8x1xf32, #tpu.memory_space<vmem>>) attributes {dimension_semantics = [#tpu.dimension_semantics<parallel>], iteration_bounds = array<i64: 3>, scalar_prefetch = 0 : i64, scratch_operands = 0 : i64, tpu.core_type = #tpu.core_type<tc>, window_params = [{transform_indices = @transform_0, window_bounds = array<i64: 8, 32>}, {transform_indices = @transform_1, window_bounds = array<i64: 8, 32>}, {transform_indices = @transform_2, window_bounds = array<i64: 8, 32>}, {transform_indices = @transform_3, window_bounds = array<i64: 1>}, {transform_indices = @transform_4, window_bounds = array<i64: 8, 1>}]} {
    %c0 = arith.constant 0 : index
    %c0_0 = arith.constant 0 : index
    %0 = vector.load %arg1[%c0, %c0_0] : memref<8x32xf32, #tpu.memory_space<vmem>>, vector<8x32xf32>
    %c0_1 = arith.constant 0 : index
    %c0_2 = arith.constant 0 : index
    %1 = vector.load %arg2[%c0_1, %c0_2] : memref<8x32xf32, #tpu.memory_space<vmem>>, vector<8x32xf32>
    %c0_3 = arith.constant 0 : index
    %c0_4 = arith.constant 0 : index
    %2 = vector.load %arg3[%c0_3, %c0_4] : memref<8x32xf32, #tpu.memory_space<vmem>>, vector<8x32xf32>
    %c0_5 = arith.constant 0 : index
    %3 = memref.load %arg4[%c0_5] : memref<1xf32, #tpu.memory_space<smem>>
    %4 = arith.mulf %0, %1 : vector<8x32xf32>
    %cst = arith.constant dense<0.000000e+00> : vector<8xf32>
    %5 = vector.multi_reduction <add>, %4, %cst [1] : vector<8x32xf32> to vector<8xf32>
    %6 = vector.shape_cast %5 : vector<8xf32> to vector<8x1xf32>
    %7 = arith.mulf %0, %2 : vector<8x32xf32>
    %cst_6 = arith.constant dense<0.000000e+00> : vector<8xf32>
    %8 = vector.multi_reduction <add>, %7, %cst_6 [1] : vector<8x32xf32> to vector<8xf32>
    %9 = vector.shape_cast %8 : vector<8xf32> to vector<8x1xf32>
    %10 = arith.mulf %0, %0 : vector<8x32xf32>
    %cst_7 = arith.constant dense<0.000000e+00> : vector<8xf32>
    %11 = vector.multi_reduction <add>, %10, %cst_7 [1] : vector<8x32xf32> to vector<8xf32>
    %12 = vector.shape_cast %11 : vector<8xf32> to vector<8x1xf32>
    %13 = arith.mulf %1, %1 : vector<8x32xf32>
    %cst_8 = arith.constant dense<0.000000e+00> : vector<8xf32>
    %14 = vector.multi_reduction <add>, %13, %cst_8 [1] : vector<8x32xf32> to vector<8xf32>
    %15 = vector.shape_cast %14 : vector<8xf32> to vector<8x1xf32>
    %16 = arith.mulf %2, %2 : vector<8x32xf32>
    %cst_9 = arith.constant dense<0.000000e+00> : vector<8xf32>
    %17 = vector.multi_reduction <add>, %16, %cst_9 [1] : vector<8x32xf32> to vector<8xf32>
    %18 = vector.shape_cast %17 : vector<8xf32> to vector<8x1xf32>
    %cst_10 = arith.constant 9.99999993E-9 : f32
    %cst_11 = arith.constant 9.99999993E-9 : f32
    %19 = arith.mulf %cst_10, %cst_11 : f32
    %20 = vector.broadcast %19 : f32 to vector<8x1xf32>
    %21 = arith.maximumf %12, %20 : vector<8x1xf32>
    %22 = math.rsqrt %21 : vector<8x1xf32>
    %cst_12 = arith.constant 9.99999993E-9 : f32
    %cst_13 = arith.constant 9.99999993E-9 : f32
    %23 = arith.mulf %cst_12, %cst_13 : f32
    %24 = vector.broadcast %23 : f32 to vector<8x1xf32>
    %25 = arith.maximumf %15, %24 : vector<8x1xf32>
    %26 = math.rsqrt %25 : vector<8x1xf32>
    %cst_14 = arith.constant 9.99999993E-9 : f32
    %cst_15 = arith.constant 9.99999993E-9 : f32
    %27 = arith.mulf %cst_14, %cst_15 : f32
    %28 = vector.broadcast %27 : f32 to vector<8x1xf32>
    %29 = arith.maximumf %18, %28 : vector<8x1xf32>
    %30 = math.rsqrt %29 : vector<8x1xf32>
    %31 = arith.mulf %9, %30 : vector<8x1xf32>
    %32 = arith.mulf %6, %26 : vector<8x1xf32>
    %33 = arith.subf %31, %32 : vector<8x1xf32>
    %34 = arith.mulf %22, %33 : vector<8x1xf32>
    %35 = vector.broadcast %3 : f32 to vector<8x1xf32>
    %36 = arith.addf %34, %35 : vector<8x1xf32>
    %cst_16 = arith.constant 0.000000e+00 : f32
    %37 = vector.broadcast %cst_16 : f32 to vector<8x1xf32>
    %38 = arith.maximumf %36, %37 : vector<8x1xf32>
    %39 = tpu.iota {dimensions = array<i32: 0>} : vector<8x1xi32>
    %c8_i32 = arith.constant 8 : i32
    %40 = arith.muli %arg0, %c8_i32 : i32
    %41 = vector.broadcast %40 : i32 to vector<8x1xi32>
    %42 = arith.addi %41, %39 : vector<8x1xi32>
    %c20_i32 = arith.constant 20 : i32
    %43 = vector.broadcast %c20_i32 : i32 to vector<8x1xi32>
    %44 = arith.cmpi slt, %42, %43 : vector<8x1xi32>
    %cst_17 = arith.constant 0.000000e+00 : f32
    %45 = vector.broadcast %cst_17 : f32 to vector<8x1xf32>
    %46 = arith.select %44, %38, %45 : vector<8x1xi1>, vector<8x1xf32>
    %c0_18 = arith.constant 0 : index
    %c0_19 = arith.constant 0 : index
    %47 = vector.load %arg5[%c0_18, %c0_19] : memref<8x1xf32, #tpu.memory_space<vmem>>, vector<8x1xf32>
    tpu.vector_store %arg5[%c0_18, %c0_19], %46 {strides = array<i32>} : memref<8x1xf32, #tpu.memory_space<vmem>>, vector<8x1xf32>,
    return
  }
  func.func @transform_0(%arg0: i32) -> (i32, i32) {
    %c0_i32 = arith.constant 0 : i32
    %c0_i32_0 = arith.constant 0 : i32
    return %arg0, %c0_i32 : i32, i32
  }
  func.func @transform_1(%arg0: i32) -> (i32, i32) {
    %c0_i32 = arith.constant 0 : i32
    %c0_i32_0 = arith.constant 0 : i32
    return %arg0, %c0_i32 : i32, i32
  }
  func.func @transform_2(%arg0: i32) -> (i32, i32) {
    %c0_i32 = arith.constant 0 : i32
    %c0_i32_0 = arith.constant 0 : i32
    return %arg0, %c0_i32 : i32, i32
  }
  func.func @transform_3(%arg0: i32) -> i32 {
    %c0_i32 = arith.constant 0 : i32
    %c0_i32_0 = arith.constant 0 : i32
    return %c0_i32 : i32
  }
  func.func @transform_4(%arg0: i32) -> (i32, i32) {
    %c0_i32 = arith.constant 0 : i32
    %c0_i32_0 = arith.constant 0 : i32
    return %arg0, %c0_i32 : i32, i32
  }
}

</mosaic_0001>

<bundles_post_ra>
// kernel: tpu_custom_call.1
= control target key start
LH: loop header
LB: loop body
LE: loop exit
PB: predicated region body
PF: predicated region fallthrough
CT: control target
= control target key end

     0   :  { %s857_s0 = inlined_call_operand.hbm [shape: f32[20,32], index: 0, kind: input, shape index: {}]   ;;  %s858_s1 = inlined_call_operand.hbm [shape: f32[20,32], index: 1, kind: input, shape index: {}]   ;;  %s859_s2 = inlined_call_operand.hbm [shape: f32[20,32], index: 2, kind: input, shape index: {}]   ;;  %s860_s3 = inlined_call_operand.<no memory space> [shape: f32[1], index: 3, kind: input, shape index: {}]   ;;  %s861_s4 = inlined_call_operand.vmem [shape: f32[24,1], index: 4, kind: output, shape index: {}]  }
   0x1   :  { %9 = sst [smem:[#allocation2]] %s860_s3 }
   0x2   :  { %10 = vsyncpa [#allocation4], 0 }
   0x3   :  { %12 = vsyncpa [#allocation4 + $0x1], 0 }
   0x4   :  { %13 = vsyncpa [#allocation6], 0 }
   0x5   :  { %15 = vsyncpa [#allocation6 + $0x1], 0  ;;  %s703_s17 = smov 0   ;;  %s705_s18 = smov 0  }
   0x6   :  { %s707_s19 = smov 0   ;;  %s709_s20 = smov 0  }
   0x7 LB: > { %s722_s3 = sadd.s32 4294967295, %s673_s20   ;;  %s725_s21 = sadd.s32 1, %s673_s20   ;;  %s673_s20 = sphi %s709_s20, %s868_s20   ;;  %s669_s19 = sphi %s707_s19, %s867_s19   ;;  %s665_s18 = sphi %s705_s18, %s866_s18   ;;  %s661_s17 = sphi %s703_s17, %s865_s17  }
   0x8   : > { %s25_s22 = ssub.s32 %s673_s20, %s725_s21  ;;  %s28_s23 = sadd.s32 1, %s669_s19 }
   0x9   : > { %p26_p0 = scmp.eq.s32.totalorder %s25_s22, 0  ;;  %p35_p1 = scmp.ne.s32.totalorder %s669_s19, %s665_s18 }
   0xa   : > { %p36_p2 = scmp.eq.s32.totalorder %s673_s20, 0  ;;  %p41_p3 = scmp.ne.s32.totalorder %s665_s18, %s661_s17 }
   0xb   : > { %s735_s24 = scalar_select %p26_p0, %s669_s19, %s28_s23  }
   0xc   : > { %p37_p4 = por %p36_p2, %p35_p1  ;;  %p42_p5 = scmp.eq.s32.totalorder %s722_s3, 0 }
   0xd   : > { %p506_p6 = scmp.lt.s32.totalorder %s673_s20, 3  ;;  %s167_s26 = sand.u32 1, %s669_s19  }
   0xe   : > { %p739_p7 = por %p42_p5, %p41_p3  ;;  %s746_s27 = sshll.u32 %s167_s26, 3 }
   0xf   : > { %s749_s28 = sshll.u32 %s673_s20, 3  ;;  %p751_p8 = pnand %p506_p6, %p37_p4 }
  0x10   : > { %s186_s30 = sand.u32 1, %s673_s20   ;;  %s194_s7 = scalar_lea.hbm %s858_s1, %s749_s28 }
  0x11   : > { %s196_s8 = sshll.u32 %s194_s7, 4  ;;  %s190_s9 = scalar_lea.vmem [#allocation5], %s746_s27  ;;  %s197_s8 = int_to_ptr.hbm [resolvable:$true] %s196_s8 }
  0x12   : > { %s198_s10 = sshll.u32 %s190_s9, 4  ;;  %s761_s11 = scalar_lea.sflag [#allocation6], %s186_s30  ;;  %s199_s10 = int_to_ptr.vmem [resolvable:$true] %s198_s10 }
  0x13   : > { %s545_s12 = sshra.s32 %s197_s8, 4  ;;  %p549_p10 = pneg %p751_p8  ;;  %s546_s12 = int_to_ptr.hbm [resolvable:$true] %s545_s12 }
  0x14   : > { %s547_s13 = scalar_lea.hbm %s546_s12, 8  ;;  %s552_s16 = scalar_lea.hbm %s858_s1, 24 }
  0x15   : > { %p548_p9 = scmp.ne.s32.totalorder %s546_s12, %s547_s13  ;;  %p553_p13 = scmp.lt.s32.totalorder %s546_s12, %s858_s1 }
  0x16   : > { %p554_p0 = scmp.lt.s32.totalorder %s552_s16, %s547_s13 }
  0x17   : > { %p550_p11 = pnand %p549_p10, %p548_p9 }
  0x18   : > { %p555_p1 = por %p554_p0, %p553_p13 }
  0x19   : > { %p551_p12 = pneg %p550_p11 }
  0x1b   : > { %p556_p2 = pnand %p555_p1, %p551_p12 }
  0x1d   : > { %559 = shalt.err (!%p556_p2)
}
  0x1e   : > { %502 = dma.hbm_to_vmem [thread:$0]  (!%p751_p8), %s197_s8, 128, %s199_s10, %s761_s11  }
  0x1f   : > { %p482_p3 = scmp.ge.s32.totalorder %s673_s20, 1  ;;  %p222_p4 = scmp.lt.s32.totalorder %s673_s20, 4 }
  0x20   : > { %s175_s6 = scalar_lea.hbm %s857_s0, %s749_s28  ;;  %s171_s9 = scalar_lea.vmem [#allocation3], %s746_s27 }
  0x21   : > { %p779_p5 = pnand %p482_p3, %p222_p4  ;;  %s177_s7 = sshll.u32 %s175_s6, 4  ;;  %s178_s7 = int_to_ptr.hbm [resolvable:$true] %s177_s7 }
  0x22   : > { %s179_s12 = sshll.u32 %s171_s9, 4  ;;  %s168_s13 = scalar_lea.sflag [#allocation4], %s167_s26  ;;  %s180_s12 = int_to_ptr.vmem [resolvable:$true] %s179_s12 }
  0x23   : > { %s575_s14 = sshra.s32 %s178_s7, 4  ;;  %s582_s15 = scalar_lea.hbm %s857_s0, 24  ;;  %s576_s14 = int_to_ptr.hbm [resolvable:$true] %s575_s14 }
  0x24   : > { %s577_s8 = scalar_lea.hbm %s576_s14, 8  ;;  %p583_p12 = scmp.lt.s32.totalorder %s576_s14, %s857_s0 }
  0x25   : > { %p578_p6 = scmp.ne.s32.totalorder %s576_s14, %s577_s8  ;;  %p584_p13 = scmp.lt.s32.totalorder %s582_s15, %s577_s8 }
  0x27   : > { %p580_p9 = pnand %p578_p6, %p549_p10  ;;  %p585_p0 = por %p584_p13, %p583_p12 }
  0x29   : > { %p581_p11 = pneg %p580_p9 }
  0x2b   : > { %p586_p1 = pnand %p585_p0, %p581_p11 }
  0x2d   : > { %589 = shalt.err (!%p586_p1)
}
  0x2e   : > { %499 = dma.hbm_to_vmem [thread:$0]  (!%p751_p8), %s178_s7, 128, %s180_s12, %s168_s13  }
  0x2f   : > { %s213_s30 = scalar_lea.hbm %s859_s2, %s749_s28  ;;  %s209_s6 = scalar_lea.vmem [#allocation7], %s746_s27 }
  0x30   : > { %s215_s5 = sshll.u32 %s213_s30, 4  ;;  %s217_s9 = sshll.u32 %s209_s6, 4  ;;  %s216_s5 = int_to_ptr.hbm [resolvable:$true] %s215_s5  ;;  %s218_s9 = int_to_ptr.vmem [resolvable:$true] %s217_s9 }
  0x31   : > { %s605_s14 = sshra.s32 %s216_s5, 4  ;;  %s612_s7 = scalar_lea.hbm %s859_s2, 24  ;;  %s606_s14 = int_to_ptr.hbm [resolvable:$true] %s605_s14 }
  0x32   : > { %s607_s8 = scalar_lea.hbm %s606_s14, 8  ;;  %p613_p6 = scmp.lt.s32.totalorder %s606_s14, %s859_s2 }
  0x33   : > { %p608_p2 = scmp.ne.s32.totalorder %s606_s14, %s607_s8  ;;  %p614_p9 = scmp.lt.s32.totalorder %s612_s7, %s607_s8 }
  0x35   : > { %p610_p3 = pnand %p608_p2, %p549_p10  ;;  %p615_p11 = por %p614_p9, %p613_p6 }
  0x37   : > { %p611_p4 = pneg %p610_p3 }
  0x39   : > { %p616_p12 = pnand %p615_p11, %p611_p4 }
  0x3b   : > { %619 = shalt.err (!%p616_p12)
}
  0x3c   : > { %505 = dma.hbm_to_vmem [thread:$0]  (!%p751_p8), %s216_s5, 128, %s218_s9, %s761_s11  }
  0x3d   : > { %226 = sbr.rel (%p779_p5) target bundleno = 230 (0xe6), region = 36  ;;  %s228_s27 = sand.u32 (!%p779_p5), 1, %s665_s18  }
  0x3e   : > { %s483_s28 = sshll.u32 (!%p779_p5), %s228_s27, 3  ;;  %s229_s15 = scalar_lea.sflag (!%p779_p5), [#allocation4], %s228_s27 }
  0x3f   : > { %s232_s16 = scalar_lea.vmem (!%p779_p5), [#allocation3], %s483_s28 }
  0x42   : > { %652 = dma.done.wait (%p739_p7), %s229_s15, 128  }
  0x43   : > { %654 = vsyncadd (%p739_p7), %s229_s15, 4294967168  ;;  %s238_s17 = sand.u32 1, %s722_s3   ;;  %s242_s26 = scalar_lea.vmem [#allocation5], %s483_s28 }
  0x44   : > { %s239_s29 = scalar_lea.sflag [#allocation6], %s238_s17 }
  0x45   : > { %656 = dma.done.wait (%p739_p7), %s239_s29, 256  }
  0x46   : > { %658 = vsyncadd (%p739_p7), %s239_s29, 4294967040  ;;  %v292_v0 = vld [vmem:[%s242_s26] sm:$0xff]  ;;  %vm296_vm0 = vcmask 261120   ;;  %v291_v1 = vld [vmem:[%s232_s16] sm:$0xff]  ;;  %s252_s11 = scalar_lea.vmem [#allocation7], %s483_s28  ;;  %v356_v33 = vlaneseq  ;;  %s835_s25 = sld [smem:[#allocation2]] }
  0x47   : > { %v308_v2 = vmul.f32 %v292_v0, %v292_v0  ;;  %v304_v3 = vmul.f32 %v291_v1, %v291_v1  ;;  %v293_v4 = vld [vmem:[%s252_s11] sm:$0xff]  ;;  %v295_v10 = vmul.f32 %v292_v0, %v291_v1  ;;  %p287_p7 = scmp.lt.s32.totalorder %s722_s3, 2  ;;  %s487_s23 = sshll.u32 %s722_s3, 3  ;;  %vm363_vm11 = vcmask 7168  }
  0x48   : > { %v300_v5 = vmul.f32 %v293_v4, %v291_v1  ;;  %v312_v9 = vmul.f32 %v293_v4, %v293_v4  ;;  %v357_v40 = vshrl.u32 %v356_v33, 7  ;;  %v359_v44 = vstv %s487_s23 }
  0x49   : > { %v309_v6 = vsel %vm296_vm0, %v308_v2, 0.0  ;;  %v305_v7 = vsel %vm296_vm0, %v304_v3, 0.0  ;;  %v297_v12 = vsel %vm296_vm0, %v295_v10, 0.0  ;;  %s870_s3 = smov (!%p287_p7, %s722_s3), 2 }
  0x4a   : > { %310 = vadd.xlane.f32.xlu0 %v309_v6  ;;  %306 = vadd.xlane.f32.xlu1 %v305_v7  ;;  %v301_v8 = vsel %vm296_vm0, %v300_v5, 0.0  ;;  %v313_v11 = vsel %vm296_vm0, %v312_v9, 0.0  ;;  %v360_v49 = vadd.s32 %v359_v44, %v357_v40  ;;  %s486_s22 = sshll.u32 %s870_s3, 3 }
  0x4b   : > { %302 = vadd.xlane.f32.xlu2 %v301_v8  ;;  %s290_s6 = scalar_lea.vmem %s861_s4, %s486_s22 }
  0x4c   : > { %v353_v47 = vstv %s835_s25  ;;  %vm361_vm10 = vcmp.lt.s32.totalorder %v360_v49, 20 }
  0x52   : > { %314 = vadd.xlane.f32.xlu0 %v313_v11  ;;  %298 = vadd.xlane.f32.xlu1 %v297_v12 }
  0xbd   : > { %v311_v13 = vpop.xlane.xlu0 %310  ;;  %v307_v14 = vpop.xlane.xlu1 %306 }
  0xbe   : > { %v327_v15 = vmax.f32 %v311_v13, 1e-16  ;;  %v316_v16 = vmax.f32 %v307_v14, 1e-16  ;;  %v303_v39 = vpop.xlane.xlu2 %302 }
  0xc0   : > { %539 = vrsqrt.f32 %v327_v15  ;;  %vm334_vm2 = vweird.f32 %v327_v15  ;;  %vm323_vm7 = vweird.f32 %v316_v16 }
  0xc1   : > { %541 = vrsqrt.f32 %v316_v16 }
  0xc5   : > { %v315_v17 = vpop.xlane.xlu0 %314  ;;  %v299_v37 = vpop.xlane.xlu1 %298 }
  0xc6   : > { %v540_v18 = vpop.eup %539  ;;  %v338_v19 = vmax.f32 %v315_v17, 1e-16 }
  0xc7   : > { %v542_v20 = vpop.eup %541  ;;  %v329_v21 = vmul.f32 %v540_v18, %v327_v15  ;;  %vm335_vm1 = vweird.f32 %v540_v18 }
  0xc8   : > { %543 = vrsqrt.f32 %v338_v19  ;;  %v318_v23 = vmul.f32 %v542_v20, %v316_v16  ;;  %vm336_vm4 = vmor %vm334_vm2, %vm335_vm1  ;;  %vm345_vm5 = vweird.f32 %v338_v19  ;;  %vm324_vm8 = vweird.f32 %v542_v20 }
  0xc9   : > { %v330_v22 = vmul.f32 %v540_v18, %v329_v21  ;;  %vm325_vm9 = vmor %vm323_vm7, %vm324_vm8 }
  0xca   : > { %v319_v25 = vmul.f32 %v542_v20, %v318_v23 }
  0xcb   : > { %v331_v24 = vmul.f32 0.5, %v330_v22 }
  0xcc   : > { %v320_v29 = vmul.f32 0.5, %v319_v25 }
  0xcd   : > { %v332_v28 = vsub.f32 1.5, %v331_v24 }
  0xce   : > { %v544_v26 = vpop.eup %543  ;;  %v321_v34 = vsub.f32 1.5, %v320_v29 }
  0xcf   : > { %v340_v27 = vmul.f32 %v544_v26, %v338_v19  ;;  %v333_v32 = vmul.f32 %v540_v18, %v332_v28  ;;  %vm346_vm3 = vweird.f32 %v544_v26 }
  0xd0   : > { %vm347_vm6 = vmor %vm345_vm5, %vm346_vm3  ;;  %v322_v41 = vmul.f32 %v542_v20, %v321_v34 }
  0xd1   : > { %v341_v30 = vmul.f32 %v544_v26, %v340_v27  ;;  %v337_v36 = vsel %vm336_vm4, %v540_v18, %v333_v32 }
  0xd2   : > { %v350_v43 = vmul.f32 %v337_v36, %v299_v37  ;;  %v326_v48 = vsel %vm325_vm9, %v542_v20, %v322_v41 }
  0xd3   : > { %v342_v31 = vmul.f32 0.5, %v341_v30 }
  0xd5   : > { %v343_v35 = vsub.f32 1.5, %v342_v31 }
  0xd7   : > { %v344_v38 = vmul.f32 %v544_v26, %v343_v35 }
  0xd9   : > { %v348_v42 = vsel %vm347_vm6, %v544_v26, %v344_v38 }
  0xda   : > { %v349_v45 = vmul.f32 %v348_v42, %v303_v39 }
  0xdc   : > { %v351_v46 = vsub.f32 %v349_v45, %v350_v43 }
  0xde   : > { %v352_v50 = vmul.f32 %v351_v46, %v326_v48 }
  0xe0   : > { %v354_v51 = vadd.f32 %v353_v47, %v352_v50 }
  0xe2   : > { %v355_v52 = vmax.f32 %v354_v51, 0.0 }
  0xe4   : > { %v362_v53 = vsel %vm361_vm10, %v355_v52, 0.0 }
  0xe5   : > { %364 = vst.msk [vmem:[%s290_s6] sm:$0xff] %vm363_vm11, %v362_v53 }
  0xe6 PF: > { %p18_p8 = scmp.ge.s32.totalorder %s725_s21, 5   ;;  %s865_s17 = smov %s665_s18 }
  0xe7   : > { %s866_s18 = smov %s669_s19  ;;  %s867_s19 = smov %s735_s24 }
  0xe8   : > { %s868_s20 = smov %s725_s21  ;;  %20 = sbr.rel (!%p18_p8) target bundleno = 7 (0x7), region = 100 }
  0xed   :  { %384 = vsyncpa [#allocation4], 1 }
  0xee   :  { %386 = vsyncpa [#allocation4 + $0x1], 1 }
  0xef   :  { %387 = vsyncpa [#allocation6], 1 }
  0xf0   :  { %389 = vsyncpa [#allocation6 + $0x1], 1 }

</bundles_post_ra>
